<compile_context>
chip_gen: v7x
topology: tpu7x:2x2x1
jax: 0.10.0
libtpu: 0.0.40
codegen_flags: <defaults>
</compile_context>

<pallas_src>
import jax
import jax.numpy as jnp
from jax.experimental import pallas as pl
from jax.experimental.pallas import tpu as pltpu


def _round_up(n, m):
    return ((n + m - 1) // m) * m


def _cdiv(a, b):
    return (a + b - 1) // b


def _model_kernel(x_ref, w_ref, b_ref, o_ref):
    # x_ref : (8, T) f32 VMEM  rows = half*4 + (b*2+k), lanes = seq-within-half
    # w_ref : (8, 8) f32 VMEM  block-diag(kron(W2,W1), kron(W2,W1))
    # b_ref : (8, 1) f32 VMEM  folded bias, repeated per half
    # o_ref : (8, T) f32 VMEM  rows = half*4 + (m*2+j)
    o_ref[...] = (
        jnp.dot(w_ref[...], x_ref[...], preferred_element_type=jnp.float32)
        + b_ref[...]
    )


def model_forward(x, w1, b1, w2, b2, *, tile_s=32768):
    """x: (2, S, 2) float; w*, b* as in torch nn.Linear (W: (out,in))."""
    B, S, K = x.shape
    assert B == 2 and K == 2, "module requires batch == linear2.in_features == 2"
    f32 = jnp.float32
    x = x.astype(f32)
    w1 = w1.astype(f32)
    b1 = b1.astype(f32)
    w2 = w2.astype(f32)
    b2 = b2.astype(f32)

    # ---- fold Linear -> permute -> Linear -> permute into one 4x4 affine map ----
    # out[s, m, j] = sum_{b,k} W2[m,b]*W1[j,k]*x[b,s,k] + (sum_b W2[m,b])*b1[j] + b2[m]
    wc = jnp.kron(w2, w1)                                                # (4,4) [m*2+j, b*2+k]
    bc = (jnp.sum(w2, axis=1)[:, None] * b1[None, :] + b2[:, None]).reshape(4)
    w8 = jnp.kron(jnp.eye(2, dtype=f32), wc)                             # (8,8) block-diagonal
    b8 = jnp.tile(bc, 2).reshape(8, 1)                                   # (8,1)

    # ---- lane geometry: two S-halves stacked on sublanes -> (8, Lp) slabs ----
    half = _cdiv(S, 2)
    L = _round_up(max(half, 1), 128)                  # lanes per half, 128-aligned
    tile_s = max(128, _round_up(min(int(tile_s), 1 << 16), 128))
    g = max(1, _cdiv(L, tile_s))
    if g == 1 and L >= 256:
        g = 2                                         # keep >= 2 blocks for megacore (v7x)
    T = _round_up(_cdiv(L, g), 128)                   # lane tile (always 128-multiple)
    Lp = g * T                                        # padded lanes (pad <= (g-1)*128 + slack)

    # input slab X8[h*4 + b*2 + k, s'] = x[b, h*Lp + s', k]  (one fused XLA copy pass)
    xt = jnp.transpose(x, (0, 2, 1))                                     # (2,2,S) [b,k,s]
    xt = jnp.pad(xt, ((0, 0), (0, 0), (0, 2 * Lp - S)))                  # (2,2,2*Lp)
    x8 = jnp.transpose(xt.reshape(2, 2, 2, Lp), (2, 0, 1, 3)).reshape(8, Lp)

    out8 = pl.pallas_call(
        _model_kernel,
        out_shape=jax.ShapeDtypeStruct((8, Lp), f32),
        grid=(g,),
        in_specs=[
            pl.BlockSpec((8, T), lambda i: (0, i)),     # x slab, lane-tiled, 8-sublane dense
            pl.BlockSpec((8, 8), lambda i: (0, 0)),     # folded weights (whole array)
            pl.BlockSpec((8, 1), lambda i: (0, 0)),     # folded bias (whole array)
        ],
        out_specs=pl.BlockSpec((8, T), lambda i: (0, i)),
        compiler_params=pltpu.CompilerParams(
            dimension_semantics=("parallel",),          # shard lane blocks across TCs on v7x
        ),
    )(x8, w8, b8)

    # Y8[h*4 + m*2 + j, s'] -> out[(h*Lp+s')*2 + m, j]  == v1.permute(0,2,1).flatten(0,1)
    y = jnp.transpose(out8.reshape(2, 2, 2, Lp), (0, 3, 1, 2)).reshape(2 * Lp, 2, 2)
    return y[:S].reshape(2 * S, 2)


def _reference(x, w1, b1, w2, b2):
    v3 = jnp.einsum("bsk,jk->bsj", x, w1) + b1
    v0 = jnp.transpose(v3, (1, 2, 0))
    v1 = jnp.einsum("sjb,mb->sjm", v0, w2) + b2
    return jnp.transpose(v1, (0, 2, 1)).reshape(-1, 2)


if __name__ == "__main__":
    key = jax.random.PRNGKey(0)
    kx, k1w, k1b, k2w, k2b, kx2 = jax.random.split(key, 6)

    # deterministic nn.Linear-style init: U(-1/sqrt(in_features), 1/sqrt(in_features))
    bound = 1.0 / jnp.sqrt(2.0)
    w1 = jax.random.uniform(k1w, (2, 2), jnp.float32, -bound, bound)
    b1 = jax.random.uniform(k1b, (2,), jnp.float32, -bound, bound)
    w2 = jax.random.uniform(k2w, (2, 2), jnp.float32, -bound, bound)
    b2 = jax.random.uniform(k2b, (2,), jnp.float32, -bound, bound)

    # small shape consistent with the module (batch=2, seq=8, features=2)
    S = 8
    x = jax.random.normal(kx, (2, S, 2), dtype=jnp.float32)
    out = jax.block_until_ready(model_forward(x, w1, b1, w2, b2))
    ref = jax.block_until_ready(_reference(x, w1, b1, w2, b2))
    assert out.shape == (2 * S, 2), out.shape
    assert jnp.allclose(out, ref, atol=1e-5, rtol=1e-5), "mismatch vs reference (S=8)"

    # second check exercising the multi-block grid + odd-S / tail-padding path
    S2 = 300
    x2 = jax.random.normal(kx2, (2, S2, 2), dtype=jnp.float32)
    out2 = jax.block_until_ready(model_forward(x2, w1, b1, w2, b2, tile_s=128))
    ref2 = jax.block_until_ready(_reference(x2, w1, b1, w2, b2))
    assert out2.shape == (2 * S2, 2), out2.shape
    assert jnp.allclose(out2, ref2, atol=1e-5, rtol=1e-5), "mismatch vs reference (S=300)"

    print("KERNEL_OK")
</pallas_src>

<mosaic_0001>
module attributes {stable_mosaic.version = 11 : i64} {
  func.func @_model_kernel(%arg0: i32, %arg1: memref<8x128xf32, #tpu.memory_space<vmem>>, %arg2: memref<8x8xf32, #tpu.memory_space<vmem>>, %arg3: memref<8x1xf32, #tpu.memory_space<vmem>>, %arg4: memref<8x128xf32, #tpu.memory_space<vmem>>) attributes {dimension_semantics = [#tpu.dimension_semantics<parallel>], iteration_bounds = array<i64: 1>, scalar_prefetch = 0 : i64, scratch_operands = 0 : i64, tpu.core_type = #tpu.core_type<tc>, window_params = [{transform_indices = @transform_0, window_bounds = array<i64: 8, 128>}, {pipeline_mode = #tpu.pipeline_mode<synchronous>, transform_indices = @transform_1, window_bounds = array<i64: 8, 8>}, {pipeline_mode = #tpu.pipeline_mode<synchronous>, transform_indices = @transform_2, window_bounds = array<i64: 8, 1>}, {transform_indices = @transform_3, window_bounds = array<i64: 8, 128>}]} {
    %c0 = arith.constant 0 : index
    %c0_0 = arith.constant 0 : index
    %0 = vector.load %arg2[%c0, %c0_0] : memref<8x8xf32, #tpu.memory_space<vmem>>, vector<8x8xf32>
    %c0_1 = arith.constant 0 : index
    %c0_2 = arith.constant 0 : index
    %1 = vector.load %arg1[%c0_1, %c0_2] : memref<8x128xf32, #tpu.memory_space<vmem>>, vector<8x128xf32>
    %cst = arith.constant dense<0.000000e+00> : vector<8x128xf32>
    %2 = tpu.matmul %0, %1, %cst {dimension_numbers = #tpu.dot_dimension_numbers<[1], [0], [0], [1], [0, 0, 1, 1], [], []>} : vector<8x8xf32>, vector<8x128xf32>, vector<8x128xf32> -> vector<8x128xf32>
    %c0_3 = arith.constant 0 : index
    %c0_4 = arith.constant 0 : index
    %3 = vector.load %arg3[%c0_3, %c0_4] : memref<8x1xf32, #tpu.memory_space<vmem>>, vector<8x1xf32>
    %4 = vector.broadcast %3 : vector<8x1xf32> to vector<8x128xf32>
    %5 = arith.addf %2, %4 : vector<8x128xf32>
    %c0_5 = arith.constant 0 : index
    %c0_6 = arith.constant 0 : index
    %6 = vector.load %arg4[%c0_5, %c0_6] : memref<8x128xf32, #tpu.memory_space<vmem>>, vector<8x128xf32>
    tpu.vector_store %arg4[%c0_5, %c0_6], %5 {strides = array<i32>} : memref<8x128xf32, #tpu.memory_space<vmem>>, vector<8x128xf32>,
    return
  }
  func.func @transform_0(%arg0: i32) -> (i32, i32) {
    %c0_i32 = arith.constant 0 : i32
    %c0_i32_0 = arith.constant 0 : i32
    return %c0_i32, %arg0 : i32, i32
  }
  func.func @transform_1(%arg0: i32) -> (i32, i32) {
    %c0_i32 = arith.constant 0 : i32
    %c0_i32_0 = arith.constant 0 : i32
    %c0_i32_1 = arith.constant 0 : i32
    return %c0_i32, %c0_i32_0 : i32, i32
  }
  func.func @transform_2(%arg0: i32) -> (i32, i32) {
    %c0_i32 = arith.constant 0 : i32
    %c0_i32_0 = arith.constant 0 : i32
    %c0_i32_1 = arith.constant 0 : i32
    return %c0_i32, %c0_i32_0 : i32, i32
  }
  func.func @transform_3(%arg0: i32) -> (i32, i32) {
    %c0_i32 = arith.constant 0 : i32
    %c0_i32_0 = arith.constant 0 : i32
    return %c0_i32, %arg0 : i32, i32
  }
}

</mosaic_0001>

<bundles_post_ra>
// kernel: tpu_custom_call.1
= control target key start
LH: loop header
LB: loop body
LE: loop exit
PB: predicated region body
PF: predicated region fallthrough
CT: control target
= control target key end

     0   :  { %8 = vsyncpa [#allocation3], 0  ;;  %s242_s0 = inlined_call_operand.vmem [shape: f32[8,128], index: 0, kind: input, shape index: {}]   ;;  %s243_s1 = inlined_call_operand.hbm [shape: f32[8,8], index: 1, kind: input, shape index: {}]   ;;  %s244_s2 = inlined_call_operand.vmem [shape: f32[8,1], index: 2, kind: input, shape index: {}]   ;;  %s245_s3 = inlined_call_operand.hbm [shape: f32[8,128], index: 3, kind: output, shape index: {}]  }
   0x1   :  { %9 = vsyncpa [#allocation4], 0  ;;  %s187_s12 = smov [#allocation2]   ;;  %s139_s16 = scalar_lea.hbm %s243_s1, 128 }
   0x2   :  { %s18_s13 = sshll.u32 %s187_s12, 4  ;;  %p140_p0 = scmp.ne.s32.totalorder %s243_s1, %s139_s16  ;;  %s19_s13 = int_to_ptr.vmem [resolvable:$true] %s18_s13 }
   0x3   :  { %p143_p1 = scmp.lt.u32.totalorder %s139_s16, %s243_s1 }
   0x5   :  { %p145_p2 = pnand %p143_p1, %p140_p0 }
   0x7   :  { %148 = shalt.err (!%p145_p2)
}
   0x8   :  { %s149_s21 = scalar_lea.vmem %s19_s13, 128  ;;  %p154_p4 = scmp.lt.s32.totalorder %s19_s13, %s19_s13 }
   0x9   :  { %p150_p3 = scmp.ne.s32.totalorder %s19_s13, %s149_s21  ;;  %p155_p5 = scmp.lt.s32.totalorder %s149_s21, %s149_s21 }
   0xb   :  { %p156_p6 = por %p155_p5, %p154_p4 }
   0xd   :  { %p157_p7 = pnand %p156_p6, %p150_p3 }
   0xf   :  { %160 = shalt.err (!%p157_p7)
}
  0x10   :  { %21 = dma.hbm_to_vmem [thread:$0]  %s243_s1, 128, %s19_s13, [#allocation3]  }
  0x11   :  { %183 = dma.done.wait [#allocation3], 128  }
  0x12   :  { %184 = vsyncadd [#allocation3], 4294967168  ;;  %v188_v0 = vmov 0.0   ;;  %vm189_vm0 = vmmov 0   ;;  %v190_v1 = vmov 0   ;;  %vm35_vm1 = vcmask 64512  }
  0x13   :  { %128 = vmatprep.subr.mxu0 %v188_v0  ;;  %130 = vmatprep.mubr.msk.f32.mxu0 %vm189_vm0, %v188_v0  ;;  %v28_v2 = vld [vmem:[%s242_s0] sm:$0xff]  ;;  %s191_s1 = smov [#allocation5]  }
  0x14   :  { %138 = vset.pattern.permute.xlu0 %v190_v1  ;;  %v27_v3 = vld [vmem:[#allocation2] sm:$0xff]  ;;  %129 = vmatpush3.msra.mxu0 %v28_v2  ;;  %s116_s28 = sshll.u32 %s191_s1, 4  ;;  %s117_s28 = int_to_ptr.vmem [resolvable:$true] %s116_s28 }
  0x15   :  { %v29_v4 = vld [vmem:[%s244_s2] sm:$0xff]  ;;  %131 = vmatmul.mubr.msk.f32.vlgmr.msra.gmra.mrb[0].mxu0 %vm35_vm1, %v27_v3  ;;  %s161_s29 = scalar_lea.vmem %s117_s28, 128  ;;  %p166_p9 = scmp.lt.s32.totalorder %s117_s28, %s117_s28 }
  0x16   :  { %32 = vperm.xlu0 %138, %v29_v4   ;;  %p162_p8 = scmp.ne.s32.totalorder %s117_s28, %s161_s29  ;;  %p167_p10 = scmp.lt.s32.totalorder %s161_s29, %s161_s29 }
  0x18   :  { %p168_p11 = por %p167_p10, %p166_p9 }
  0x1a   :  { %p169_p12 = pnand %p168_p11, %p162_p8 }
  0x95   :  { %v33_v5 = vpop.permute.xlu0 %32 }
  0xe8   :  { %v105_v6 = vpop.f32.mrb[0].mxu0 }
  0xe9   :  { %v106_v7 = vadd.f32 %v105_v6, %v33_v5  ;;  %v132_v8 = vpop.f32.mrb[1].mxu0 }
  0xeb   :  { %109 = vst [vmem:[#allocation5] sm:$0xff] %v106_v7 }
  0xec   :  { %172 = shalt.err (!%p169_p12)
}
  0xed   :  { %s173_s30 = scalar_lea.hbm %s245_s3, 128 }
  0xee   :  { %p174_p13 = scmp.ne.s32.totalorder %s245_s3, %s173_s30  ;;  %p177_p0 = scmp.lt.u32.totalorder %s173_s30, %s245_s3 }
  0xf0   :  { %p179_p1 = pnand %p177_p0, %p174_p13 }
  0xf2   :  { %182 = shalt.err (!%p179_p1)
}
  0xf3   :  { %119 = dma.vmem_to_hbm [thread:$0]  %s117_s28, 128, %s245_s3, [#allocation4]  }
  0xf4   :  { %185 = dma.done.wait [#allocation4], 128  }
  0xf5   :  { %186 = vsyncadd [#allocation4], 4294967168 }
  0xf6   :  { %123 = vsyncpa [#allocation3], 1 }
  0xf7   :  { %124 = vsyncpa [#allocation4], 1 }

</bundles_post_ra>
